<compile_context>
chip_gen: v6e
topology: v6e:2x2x1
jax: 0.10.0
libtpu: 0.0.40
codegen_flags: <defaults>
</compile_context>

<pallas_src>
import functools

import jax
import jax.numpy as jnp
from jax.experimental import pallas as pl
from jax.experimental.pallas import tpu as pltpu


def _cdiv(a, b):
    return -(-a // b)


def _choose_tiling(n, d, target_bytes):
    """Pick (tile_n, n_tiles) so each per-stream f32 tile is ~target_bytes."""
    f32_row_bytes = d * 4
    if n * f32_row_bytes <= target_bytes:
        return n, 1                      # whole matrix is one (untiled) block
    rows_budget = max(8, target_bytes // f32_row_bytes)
    if n <= rows_budget:
        return n, 1
    n_tiles = _cdiv(n, rows_budget)
    tile = _cdiv(n, n_tiles)             # balance rows across tiles
    mult = 32 if tile >= 32 else 8       # sublane packing for f32/bf16/int8
    tile = _cdiv(tile, mult) * mult
    n_tiles = _cdiv(n, tile)
    return tile, n_tiles


def _mcc_loss_kernel(sk_ref, img_ref, out_ref, acc_sk_ref, acc_ph_ref, *,
                     n_true, tile_n, needs_mask,
                     mcc_sk, mcc_ph, lambda_sk, lambda_ph):
    """Streaming reduction over the batch axis for BOTH feature streams.

    grid = (n_tiles,).  sk_ref/img_ref blocks: (tile_n, d).
    acc_*_ref: VMEM (1, d) f32 accumulators of sum_rows(normalize(x)).
    out_ref block: (1, 128); only [0, 0] is meaningful (holds the final loss).
    """
    i = pl.program_id(0)

    @pl.when(i == 0)
    def _init():
        acc_sk_ref[...] = jnp.zeros_like(acc_sk_ref)
        acc_ph_ref[...] = jnp.zeros_like(acc_ph_ref)

    if needs_mask:
        rows = jax.lax.broadcasted_iota(jnp.int32, (tile_n, 1), 0)
        row_mask = (i * tile_n + rows) < n_true
    else:
        row_mask = None

    def _accumulate(x_ref, acc_ref):
        x = x_ref[...].astype(jnp.float32)
        if row_mask is not None:
            # Rows past n_true in the final (partial) tile hold unspecified
            # data; zero them before both the norm and the row-sum.
            x = jnp.where(row_mask, x, jnp.float32(0.0))
        # F.normalize(x, dim=-1, eps=1e-12) == x * rsqrt(max(||x||^2, 1e-24)).
        sumsq = jnp.sum(x * x, axis=-1, keepdims=True)
        inv_norm = jax.lax.rsqrt(jnp.maximum(sumsq, jnp.float32(1e-24)))
        # VPU multiply + sublane reduce.  The kernel is HBM-bound, so moving
        # this onto the MXU (matvec against inv_norm) is perf-neutral and
        # would add a sublane->lane relayout; keep the simple form.
        acc_ref[...] += jnp.sum(x * inv_norm, axis=0, keepdims=True)

    _accumulate(sk_ref, acc_sk_ref)
    _accumulate(img_ref, acc_ph_ref)

    @pl.when(i == pl.num_programs(0) - 1)
    def _finalize():
        inv_n2 = jnp.float32(1.0 / (float(n_true) * float(n_true)))
        rs_sk = acc_sk_ref[...]
        rs_ph = acc_ph_ref[...]
        # mean(Xn @ Xn.T) == ||sum_rows(Xn)||^2 / N^2.
        mean_sk = jnp.sum(rs_sk * rs_sk) * inv_n2
        mean_ph = jnp.sum(rs_ph * rs_ph) * inv_n2
        # lambda_* applied twice, exactly as in the PyTorch module.
        loss = (jnp.abs(mean_sk - jnp.float32(mcc_sk))
                * jnp.float32(lambda_sk * lambda_sk)
                + jnp.abs(mean_ph - jnp.float32(mcc_ph))
                * jnp.float32(lambda_ph * lambda_ph))
        out_ref[...] = jnp.full(out_ref.shape, loss, dtype=jnp.float32)


def mcc_loss(sk_feat, img_feat, neg_feat, *,
             mcc_sk, mcc_ph, lambda_sk, lambda_ph,
             tile_budget_bytes=4 * 1024 * 1024):
    """Pallas equivalent of MCCLoss.forward. Inputs: (N, D) feature matrices."""
    # neg_feat is normalized in the PyTorch forward but never used in the loss
    # value, so it is intentionally not sent to the kernel.
    del neg_feat

    n, d = sk_feat.shape
    assert img_feat.shape == (n, d), "sk_feat and img_feat must share a shape"

    tile_n, n_tiles = _choose_tiling(n, d, tile_budget_bytes)
    needs_mask = (tile_n * n_tiles != n)

    kernel = functools.partial(
        _mcc_loss_kernel,
        n_true=n, tile_n=tile_n, needs_mask=needs_mask,
        mcc_sk=float(mcc_sk), mcc_ph=float(mcc_ph),
        lambda_sk=float(lambda_sk), lambda_ph=float(lambda_ph))

    itemsize = jnp.dtype(sk_feat.dtype).itemsize
    cost = pl.CostEstimate(
        flops=8 * n * d,
        transcendentals=2 * n,
        bytes_accessed=2 * n * d * itemsize + 512)

    out = pl.pallas_call(
        kernel,
        out_shape=jax.ShapeDtypeStruct((1, 128), jnp.float32),
        grid_spec=pltpu.PrefetchScalarGridSpec(
            num_scalar_prefetch=0,
            grid=(n_tiles,),
            in_specs=[
                pl.BlockSpec((tile_n, d), lambda i: (i, 0)),
                pl.BlockSpec((tile_n, d), lambda i: (i, 0)),
            ],
            out_specs=pl.BlockSpec((1, 128), lambda i: (0, 0)),
            scratch_shapes=[pltpu.VMEM((1, d), jnp.float32),
                            pltpu.VMEM((1, d), jnp.float32)],
        ),
        compiler_params=pltpu.CompilerParams(
            dimension_semantics=("arbitrary",),
            vmem_limit_bytes=48 * 1024 * 1024,
        ),
        cost_estimate=cost,
    )(sk_feat, img_feat)

    return out[0, 0]


def _reference(sk_feat, img_feat, neg_feat, mcc_sk, mcc_ph, lambda_sk, lambda_ph):
    """Pure-JAX reference mirroring the PyTorch module (full gram matrices)."""
    def normalize(x):
        x = x.astype(jnp.float32)
        nrm = jnp.sqrt(jnp.sum(x * x, axis=-1, keepdims=True))
        return x / jnp.maximum(nrm, 1e-12)

    sk = normalize(sk_feat)
    img = normalize(img_feat)
    _ = normalize(neg_feat)  # dead in the PyTorch forward as well
    loss_sk = jnp.abs(jnp.mean(sk @ sk.T) - mcc_sk) * lambda_sk
    loss_ph = jnp.abs(jnp.mean(img @ img.T) - mcc_ph) * lambda_ph
    return loss_sk * lambda_sk + loss_ph * lambda_ph


if __name__ == "__main__":
    def check(sk, img, neg, mcc_sk, mcc_ph, lam_sk, lam_ph, **kw):
        loss = mcc_loss(sk, img, neg, mcc_sk=mcc_sk, mcc_ph=mcc_ph,
                        lambda_sk=lam_sk, lambda_ph=lam_ph, **kw)
        loss = jax.block_until_ready(loss)
        ref = _reference(sk, img, neg, mcc_sk, mcc_ph, lam_sk, lam_ph)
        assert jnp.allclose(loss, ref, atol=1e-5, rtol=1e-5), (loss, ref)

    # Case 1: small aligned shapes (batch=8, feature=32); single-tile path.
    k1, k2, k3 = jax.random.split(jax.random.PRNGKey(0), 3)
    sk_feat = jax.random.normal(k1, (8, 32), dtype=jnp.float32)
    img_feat = jax.random.normal(k2, (8, 32), dtype=jnp.float32)
    neg_feat = jax.random.normal(k3, (8, 32), dtype=jnp.float32)
    check(sk_feat, img_feat, neg_feat, 0.5, 0.5, 1.0, 1.0)

    # Case 2: odd shapes (batch=20, feature=200); unpadded non-128 last dim.
    k4, k5, k6 = jax.random.split(jax.random.PRNGKey(1), 3)
    check(jax.random.normal(k4, (20, 200), dtype=jnp.float32),
          jax.random.normal(k5, (20, 200), dtype=jnp.float32),
          jax.random.normal(k6, (20, 200), dtype=jnp.float32),
          0.3, 0.7, 2.0, 0.5)

    # Case 3: tiny tile budget to force multi-tile streaming + row masking of
    # the partial final tile (same code path large inputs take by default).
    k7, k8, k9 = jax.random.split(jax.random.PRNGKey(2), 3)
    check(jax.random.normal(k7, (50, 96), dtype=jnp.float32),
          jax.random.normal(k8, (50, 96), dtype=jnp.float32),
          jax.random.normal(k9, (50, 96), dtype=jnp.float32),
          0.25, 0.6, 1.5, 0.8, tile_budget_bytes=8192)

    print("KERNEL_OK")
</pallas_src>

<mosaic_0001>
module attributes {stable_mosaic.version = 11 : i64} {
  func.func @_mcc_loss_kernel(%arg0: i32, %arg1: memref<8x32xf32, #tpu.memory_space<vmem>>, %arg2: memref<8x32xf32, #tpu.memory_space<vmem>>, %arg3: memref<1x128xf32, #tpu.memory_space<vmem>>, %arg4: memref<1x32xf32, #tpu.memory_space<vmem>>, %arg5: memref<1x32xf32, #tpu.memory_space<vmem>>) attributes {dimension_semantics = [#tpu.dimension_semantics<arbitrary>], iteration_bounds = array<i64: 1>, scalar_prefetch = 0 : i64, scratch_operands = 2 : i64, tpu.core_type = #tpu.core_type<tc>, window_params = [{transform_indices = @transform_0, window_bounds = array<i64: 8, 32>}, {transform_indices = @transform_1, window_bounds = array<i64: 8, 32>}, {pipeline_mode = #tpu.pipeline_mode<synchronous>, transform_indices = @transform_2, window_bounds = array<i64: 1, 128>}]} {
    %c0_i32 = arith.constant 0 : i32
    %0 = arith.cmpi eq, %arg0, %c0_i32 : i32
    %1 = arith.extui %0 : i1 to i32
    %c0_i32_0 = arith.constant 0 : i32
    %2 = arith.cmpi ne, %1, %c0_i32_0 : i32
    scf.if %2 {
      %cst_19 = arith.constant 0.000000e+00 : f32
      %34 = vector.broadcast %cst_19 : f32 to vector<1x32xf32>
      %c0_20 = arith.constant 0 : index
      %c0_21 = arith.constant 0 : index
      %35 = vector.load %arg4[%c0_20, %c0_21] : memref<1x32xf32, #tpu.memory_space<vmem>>, vector<1x32xf32>
      tpu.vector_store %arg4[%c0_20, %c0_21], %34 {strides = array<i32>} : memref<1x32xf32, #tpu.memory_space<vmem>>, vector<1x32xf32>,
      %cst_22 = arith.constant 0.000000e+00 : f32
      %36 = vector.broadcast %cst_22 : f32 to vector<1x32xf32>
      %c0_23 = arith.constant 0 : index
      %c0_24 = arith.constant 0 : index
      %37 = vector.load %arg5[%c0_23, %c0_24] : memref<1x32xf32, #tpu.memory_space<vmem>>, vector<1x32xf32>
      tpu.vector_store %arg5[%c0_23, %c0_24], %36 {strides = array<i32>} : memref<1x32xf32, #tpu.memory_space<vmem>>, vector<1x32xf32>,
    } else {
    }
    %c0 = arith.constant 0 : index
    %c0_1 = arith.constant 0 : index
    %3 = vector.load %arg1[%c0, %c0_1] : memref<8x32xf32, #tpu.memory_space<vmem>>, vector<8x32xf32>
    %4 = arith.mulf %3, %3 : vector<8x32xf32>
    %cst = arith.constant dense<0.000000e+00> : vector<8xf32>
    %5 = vector.multi_reduction <add>, %4, %cst [1] : vector<8x32xf32> to vector<8xf32>
    %6 = vector.shape_cast %5 : vector<8xf32> to vector<8x1xf32>
    %cst_2 = arith.constant 1.000000e-24 : f32
    %7 = vector.broadcast %cst_2 : f32 to vector<8x1xf32>
    %8 = arith.maximumf %6, %7 : vector<8x1xf32>
    %9 = math.rsqrt %8 : vector<8x1xf32>
    %c0_3 = arith.constant 0 : index
    %c0_4 = arith.constant 0 : index
    %10 = vector.load %arg4[%c0_3, %c0_4] : memref<1x32xf32, #tpu.memory_space<vmem>>, vector<1x32xf32>
    %11 = vector.broadcast %9 : vector<8x1xf32> to vector<8x32xf32>
    %12 = arith.mulf %3, %11 : vector<8x32xf32>
    %cst_5 = arith.constant dense<0.000000e+00> : vector<32xf32>
    %13 = vector.multi_reduction <add>, %12, %cst_5 [0] : vector<8x32xf32> to vector<32xf32>
    %14 = vector.shape_cast %13 : vector<32xf32> to vector<1x32xf32>
    %15 = arith.addf %10, %14 : vector<1x32xf32>
    %c0_6 = arith.constant 0 : index
    %c0_7 = arith.constant 0 : index
    %16 = vector.load %arg4[%c0_6, %c0_7] : memref<1x32xf32, #tpu.memory_space<vmem>>, vector<1x32xf32>
    tpu.vector_store %arg4[%c0_6, %c0_7], %15 {strides = array<i32>} : memref<1x32xf32, #tpu.memory_space<vmem>>, vector<1x32xf32>,
    %c0_8 = arith.constant 0 : index
    %c0_9 = arith.constant 0 : index
    %17 = vector.load %arg2[%c0_8, %c0_9] : memref<8x32xf32, #tpu.memory_space<vmem>>, vector<8x32xf32>
    %18 = arith.mulf %17, %17 : vector<8x32xf32>
    %cst_10 = arith.constant dense<0.000000e+00> : vector<8xf32>
    %19 = vector.multi_reduction <add>, %18, %cst_10 [1] : vector<8x32xf32> to vector<8xf32>
    %20 = vector.shape_cast %19 : vector<8xf32> to vector<8x1xf32>
    %cst_11 = arith.constant 1.000000e-24 : f32
    %21 = vector.broadcast %cst_11 : f32 to vector<8x1xf32>
    %22 = arith.maximumf %20, %21 : vector<8x1xf32>
    %23 = math.rsqrt %22 : vector<8x1xf32>
    %c0_12 = arith.constant 0 : index
    %c0_13 = arith.constant 0 : index
    %24 = vector.load %arg5[%c0_12, %c0_13] : memref<1x32xf32, #tpu.memory_space<vmem>>, vector<1x32xf32>
    %25 = vector.broadcast %23 : vector<8x1xf32> to vector<8x32xf32>
    %26 = arith.mulf %17, %25 : vector<8x32xf32>
    %cst_14 = arith.constant dense<0.000000e+00> : vector<32xf32>
    %27 = vector.multi_reduction <add>, %26, %cst_14 [0] : vector<8x32xf32> to vector<32xf32>
    %28 = vector.shape_cast %27 : vector<32xf32> to vector<1x32xf32>
    %29 = arith.addf %24, %28 : vector<1x32xf32>
    %c0_15 = arith.constant 0 : index
    %c0_16 = arith.constant 0 : index
    %30 = vector.load %arg5[%c0_15, %c0_16] : memref<1x32xf32, #tpu.memory_space<vmem>>, vector<1x32xf32>
    tpu.vector_store %arg5[%c0_15, %c0_16], %29 {strides = array<i32>} : memref<1x32xf32, #tpu.memory_space<vmem>>, vector<1x32xf32>,
    %c0_i32_17 = arith.constant 0 : i32
    %31 = arith.cmpi eq, %arg0, %c0_i32_17 : i32
    %32 = arith.extui %31 : i1 to i32
    %c0_i32_18 = arith.constant 0 : i32
    %33 = arith.cmpi ne, %32, %c0_i32_18 : i32
    scf.if %33 {
      %c0_19 = arith.constant 0 : index
      %c0_20 = arith.constant 0 : index
      %34 = vector.load %arg4[%c0_19, %c0_20] : memref<1x32xf32, #tpu.memory_space<vmem>>, vector<1x32xf32>
      %c0_21 = arith.constant 0 : index
      %c0_22 = arith.constant 0 : index
      %35 = vector.load %arg5[%c0_21, %c0_22] : memref<1x32xf32, #tpu.memory_space<vmem>>, vector<1x32xf32>
      %36 = arith.mulf %34, %34 : vector<1x32xf32>
      %37 = vector.shape_cast %36 : vector<1x32xf32> to vector<1x1x32xf32>
      %cst_23 = arith.constant dense<0.000000e+00> : vector<1xf32>
      %38 = vector.multi_reduction <add>, %37, %cst_23 [1, 2] : vector<1x1x32xf32> to vector<1xf32>
      %39 = vector.shape_cast %38 : vector<1xf32> to vector<1x1x1xf32>
      %40 = vector.extract %39[0, 0, 0] : f32 from vector<1x1x1xf32>
      %cst_24 = arith.constant 1.562500e-02 : f32
      %41 = arith.mulf %40, %cst_24 : f32
      %42 = arith.mulf %35, %35 : vector<1x32xf32>
      %43 = vector.shape_cast %42 : vector<1x32xf32> to vector<1x1x32xf32>
      %cst_25 = arith.constant dense<0.000000e+00> : vector<1xf32>
      %44 = vector.multi_reduction <add>, %43, %cst_25 [1, 2] : vector<1x1x32xf32> to vector<1xf32>
      %45 = vector.shape_cast %44 : vector<1xf32> to vector<1x1x1xf32>
      %46 = vector.extract %45[0, 0, 0] : f32 from vector<1x1x1xf32>
      %cst_26 = arith.constant 1.562500e-02 : f32
      %47 = arith.mulf %46, %cst_26 : f32
      %cst_27 = arith.constant 5.000000e-01 : f32
      %48 = arith.subf %41, %cst_27 : f32
      %49 = math.absf %48 : f32
      %cst_28 = arith.constant 1.000000e+00 : f32
      %50 = arith.mulf %49, %cst_28 : f32
      %cst_29 = arith.constant 5.000000e-01 : f32
      %51 = arith.subf %47, %cst_29 : f32
      %52 = math.absf %51 : f32
      %cst_30 = arith.constant 1.000000e+00 : f32
      %53 = arith.mulf %52, %cst_30 : f32
      %54 = arith.addf %50, %53 : f32
      %55 = vector.broadcast %54 : f32 to vector<1x128xf32>
      %c0_31 = arith.constant 0 : index
      %c0_32 = arith.constant 0 : index
      %56 = vector.load %arg3[%c0_31, %c0_32] : memref<1x128xf32, #tpu.memory_space<vmem>>, vector<1x128xf32>
      tpu.vector_store %arg3[%c0_31, %c0_32], %55 {strides = array<i32>} : memref<1x128xf32, #tpu.memory_space<vmem>>, vector<1x128xf32>,
    } else {
    }
    return
  }
  func.func @transform_0(%arg0: i32) -> (i32, i32) {
    %c0_i32 = arith.constant 0 : i32
    %c0_i32_0 = arith.constant 0 : i32
    return %arg0, %c0_i32 : i32, i32
  }
  func.func @transform_1(%arg0: i32) -> (i32, i32) {
    %c0_i32 = arith.constant 0 : i32
    %c0_i32_0 = arith.constant 0 : i32
    return %arg0, %c0_i32 : i32, i32
  }
  func.func @transform_2(%arg0: i32) -> (i32, i32) {
    %c0_i32 = arith.constant 0 : i32
    %c0_i32_0 = arith.constant 0 : i32
    %c0_i32_1 = arith.constant 0 : i32
    return %c0_i32, %c0_i32_0 : i32, i32
  }
}

</mosaic_0001>

<bundles_post_ra>
// kernel: tpu_custom_call.1
= control target key start
LH: loop header
LB: loop body
LE: loop exit
PB: predicated region body
PF: predicated region fallthrough
CT: control target
= control target key end

     0   :  { %7 = vsyncpa [#allocation5], 0  ;;  %s251_s0 = inlined_call_operand.hbm [shape: f32[8,32], index: 0, kind: input, shape index: {}]   ;;  %s252_s1 = inlined_call_operand.hbm [shape: f32[8,32], index: 1, kind: input, shape index: {}]   ;;  %s253_s2 = inlined_call_operand.hbm [shape: f32[1,128], index: 2, kind: output, shape index: {}]  }
   0x1   :  { %8 = vsyncpa [#allocation8], 0 }
   0x2   :  { %9 = vsyncpa [#allocation6], 0  ;;  %s213_s9 = smov [#allocation4]   ;;  %s214_s11 = smov [#allocation7]  }
   0x3   :  { %s16_s10 = sshll.u32 %s213_s9, 4  ;;  %s26_s12 = sshll.u32 %s214_s11, 4  ;;  %s17_s10 = int_to_ptr.vmem [resolvable:$true] %s16_s10  ;;  %s27_s12 = int_to_ptr.vmem [resolvable:$true] %s26_s12 }
   0x4   :  { %s155_s13 = scalar_lea.vmem %s17_s10, 128  ;;  %p160_p1 = scmp.lt.s32.totalorder %s17_s10, %s17_s10 }
   0x5   :  { %p156_p0 = scmp.ne.s32.totalorder %s17_s10, %s155_s13  ;;  %p161_p2 = scmp.lt.s32.totalorder %s155_s13, %s155_s13 }
   0x7   :  { %p162_p3 = por %p161_p2, %p160_p1 }
   0x9   :  { %p163_p4 = pnand %p162_p3, %p156_p0 }
   0xb   :  { %166 = shalt.err (!%p163_p4)
}
   0xc   :  { %19 = dma.hbm_to_vmem [thread:$0]  %s251_s0, 128, %s17_s10, [#allocation5]  }
   0xd   :  { %s175_s16 = scalar_lea.vmem %s27_s12, 128  ;;  %p180_p6 = scmp.lt.s32.totalorder %s27_s12, %s27_s12 }
   0xe   :  { %p176_p5 = scmp.ne.s32.totalorder %s27_s12, %s175_s16  ;;  %p181_p7 = scmp.lt.s32.totalorder %s175_s16, %s175_s16 }
  0x10   :  { %p182_p8 = por %p181_p7, %p180_p6 }
  0x12   :  { %p183_p9 = pnand %p182_p8, %p176_p5 }
  0x14   :  { %186 = shalt.err (!%p183_p9)
}
  0x15   :  { %29 = dma.hbm_to_vmem [thread:$0]  %s252_s1, 128, %s27_s12, [#allocation8]  }
  0x16   :  { %207 = dma.done.wait [#allocation5], 128  }
  0x17   :  { %208 = vsyncadd [#allocation5], 4294967168 }
  0x18   :  { %209 = dma.done.wait [#allocation8], 128  }
  0x19   :  { %210 = vsyncadd [#allocation8], 4294967168  ;;  %v43_v0 = vld [vmem:[#allocation4] sm:$0xff]  ;;  %vm45_vm0 = vcmask 261120   ;;  %v63_v1 = vld [vmem:[#allocation7] sm:$0xff]  ;;  %vm40_vm1 = vcmask 253952  }
  0x1a   :  { %v44_v2 = vmul.f32 %v43_v0, %v43_v0  ;;  %v64_v3 = vmul.f32 %v63_v1, %v63_v1  ;;  %v215_v6 = vmov 0.0   ;;  %s216_s23 = smov [#allocation9]  }
  0x1b   :  { %41 = vst.msk [vmem:[#allocation2] sm:$0x1] %vm40_vm1, %v215_v6  ;;  %42 = vst.msk [vmem:[#allocation3] sm:$0x1] %vm40_vm1, %v215_v6  ;;  %s123_s24 = sshll.u32 %s216_s23, 4  ;;  %s124_s24 = int_to_ptr.vmem [resolvable:$true] %s123_s24 }
  0x1c   :  { %v46_v4 = vsel %vm45_vm0, %v44_v2, 0.0  ;;  %v65_v5 = vsel %vm45_vm0, %v64_v3, 0.0  ;;  %s187_s28 = scalar_lea.vmem %s124_s24, 16  ;;  %s191_s29 = scalar_lea.vmem %s124_s24, 32 }
  0x1d   :  { %47 = vadd.xlane.f32.xlu0 %v46_v4  ;;  %p188_p10 = scmp.ne.s32.totalorder %s124_s24, %s187_s28  ;;  %p192_p11 = scmp.lt.s32.totalorder %s124_s24, %s124_s24 }
  0x1e   :  { %p193_p12 = scmp.lt.s32.totalorder %s191_s29, %s187_s28 }
  0x20   :  { %p194_p13 = por %p193_p12, %p192_p11 }
  0x21   :  { %66 = vadd.xlane.f32.xlu0 %v65_v5 }
  0x22   :  { %v51_v25 = vld [vmem:[#allocation2] sm:$0x1]  ;;  %v70_v30 = vld [vmem:[#allocation3] sm:$0x1]  ;;  %p195_p0 = pnand %p194_p13, %p188_p10 }
  0xa6   :  { %v48_v7 = vpop.xlane.xlu0 %47 }
  0xa7   :  { %v49_v8 = vmax.f32 %v48_v7, 1e-24 }
  0xa9   :  { %143 = vrsqrt.f32 %v49_v8 }
  0xaa   :  { %v67_v9 = vpop.xlane.xlu0 %66 }
  0xab   :  { %v68_v10 = vmax.f32 %v67_v9, 1e-24 }
  0xad   :  { %145 = vrsqrt.f32 %v68_v10 }
  0xb6   :  { %v144_v11 = vpop.eup %143 }
  0xb7   :  { %v52_v12 = vmul.f32 %v144_v11, %v43_v0 }
  0xb9   :  { %v53_v13 = vsel %vm45_vm0, %v52_v12, 0.0 }
  0xba   :  { %v146_v14 = vpop.eup %145  ;;  %v54_v15 = vrot.slane %v53_v13, 4 }
  0xbb   :  { %v71_v16 = vmul.f32 %v146_v14, %v63_v1 }
  0xbc   :  { %v55_v17 = vadd.f32 %v54_v15, %v53_v13 }
  0xbd   :  { %v72_v18 = vsel %vm45_vm0, %v71_v16, 0.0 }
  0xbe   :  { %v56_v19 = vrot.slane %v55_v17, 2  ;;  %v73_v20 = vrot.slane %v72_v18, 4 }
  0xc0   :  { %v57_v21 = vadd.f32 %v56_v19, %v55_v17  ;;  %v74_v22 = vadd.f32 %v73_v20, %v72_v18 }
  0xc2   :  { %v58_v23 = vrot.slane %v57_v21, 1  ;;  %v75_v24 = vrot.slane %v74_v22, 2 }
  0xc4   :  { %v59_v26 = vadd.f32 %v58_v23, %v57_v21  ;;  %v76_v27 = vadd.f32 %v75_v24, %v74_v22 }
  0xc6   :  { %v77_v28 = vrot.slane %v76_v27, 1  ;;  %v60_v29 = vadd.f32 %v59_v26, %v51_v25 }
  0xc8   :  { %v78_v31 = vadd.f32 %v77_v28, %v76_v27  ;;  %62 = vst.msk [vmem:[#allocation2] sm:$0x1] %vm40_vm1, %v60_v29 }
  0xca   :  { %v79_v32 = vadd.f32 %v78_v31, %v70_v30 }
  0xcc   :  { %80 = vst.msk [vmem:[#allocation3] sm:$0x1] %vm40_vm1, %v79_v32 }
  0xcf   :  { %v84_v33 = vld [vmem:[#allocation2] sm:$0x1] }
  0xd0   :  { %v86_v34 = vmul.f32 %v84_v33, %v84_v33 }
  0xd2   :  { %v87_v35 = vsel %vm40_vm1, %v86_v34, 0.0 }
  0xd3   :  { %88 = vadd.xlane.f32.xlu1 %v87_v35  ;;  %v85_v36 = vld [vmem:[#allocation3] sm:$0x1] }
  0xd4   :  { %v98_v37 = vmul.f32 %v85_v36, %v85_v36 }
  0xd6   :  { %v99_v38 = vsel %vm40_vm1, %v98_v37, 0.0 }
  0xd7   :  { %100 = vadd.xlane.f32.xlu1 %v99_v38 }
 0x15c   :  { %v89_v39 = vpop.xlane.xlu1 %88 }
 0x15d   :  { %v90_v40 = vrot.slane %v89_v39, 4 }
 0x15f   :  { %v91_v41 = vadd.f32 %v90_v40, %v89_v39 }
 0x160   :  { %v101_v42 = vpop.xlane.xlu1 %100 }
 0x161   :  { %v92_v43 = vrot.slane %v91_v41, 2  ;;  %v102_v44 = vrot.slane %v101_v42, 4 }
 0x163   :  { %v103_v45 = vadd.f32 %v102_v44, %v101_v42  ;;  %v93_v46 = vadd.f32 %v92_v43, %v91_v41 }
 0x165   :  { %v104_v47 = vrot.slane %v103_v45, 2  ;;  %v94_v48 = vrot.slane %v93_v46, 1 }
 0x167   :  { %v105_v49 = vadd.f32 %v104_v47, %v103_v45  ;;  %v95_v50 = vadd.f32 %v94_v48, %v93_v46 }
 0x169   :  { %135 = vpush %v95_v50  ;;  %v106_v51 = vrot.slane %v105_v49, 1 }
 0x16b   :  { %v107_v52 = vadd.f32 %v106_v51, %v105_v49 }
 0x16d   :  { %137 = vpush %v107_v52 }
 0x19a   :  { %s136_s0 = spop %135 }
 0x19b   :  { %s97_s1 = smul.f32 0.015625, %s136_s0 }
 0x19d   :  { %s133_s20 = sadd.f32 -0.5, %s97_s1 }
 0x19e   :  { %s138_s19 = spop %137 }
 0x19f   :  { %s109_s21 = smul.f32 0.015625, %s138_s19  ;;  %s111_s25 = sand.u32 2147483647, %s133_s20 }
 0x1a1   :  { %s134_s22 = sadd.f32 -0.5, %s109_s21 }
 0x1a3   :  { %s113_s26 = sand.u32 2147483647, %s134_s22 }
 0x1a4   :  { %s114_s27 = sadd.f32 %s113_s26, %s111_s25 }
 0x1a6   :  { %v115_v53 = vstv %s114_s27 }
 0x1a7   :  { %116 = vst [vmem:[#allocation9] sm:$0x1] %v115_v53 }
 0x1a8   :  { %198 = shalt.err (!%p195_p0)
}
 0x1a9   :  { %126 = dma.vmem_to_hbm [thread:$0]  %s124_s24, 16, %s253_s2, [#allocation6]  }
 0x1aa   :  { %211 = dma.done.wait [#allocation6], 16  }
 0x1ab   :  { %212 = vsyncadd [#allocation6], 4294967280 }
 0x1ac   :  { %130 = vsyncpa [#allocation5], 1 }
 0x1ad   :  { %131 = vsyncpa [#allocation8], 1 }
 0x1ae   :  { %132 = vsyncpa [#allocation6], 1 }

</bundles_post_ra>
